<compile_context>
chip_gen: v7x
topology: tpu7x:2x2x1
jax: 0.10.0
libtpu: 0.0.40
codegen_flags: <defaults>
</compile_context>

<pallas_src>
import math

import jax
import jax.numpy as jnp
from jax.experimental import pallas as pl
from jax.experimental.pallas import tpu as pltpu


LANE = 128                 # TPU vreg lane width; all feature dims padded to this
VMEM_LIMIT = 48 << 20      # explicit scoped-VMEM request (< v7x 64 MiB physical)
VMEM_BUDGET = 40 << 20     # working-set budget used to pick the row-tile size


def _pick_tile_rows(n_pad):
    """Largest row tile (multiple of 128 dividing n_pad) whose working set fits the budget."""
    for tm in (1024, 512, 256, 128):
        if tm > n_pad or n_pad % tm:
            continue
        need = (2 * tm * n_pad * 2            # double-buffered bf16 adj row slab
                + 2 * n_pad * LANE * 2        # resident support matrix S (bf16)
                + 2 * tm * LANE * (2 * 2 + 2 * 4))  # double-buffered out tiles (bf16+f32)
        if need <= VMEM_BUDGET:
            return tm
    # TODO(synk): for N where even TM=128 exceeds the budget (N >~ 40K rows), adj must also
    # be column-tiled over an 'arbitrary' contraction axis with a VMEM accumulator, and the
    # resident S matrix spilled/streamed from HBM.
    return 128


# ----------------------------- Pallas kernels ------------------------------ #

def _support_kernel(x_ref, w_ref, s_ref):
    """S = X @ W for one row tile (MXU bf16, f32 accumulate)."""
    s_ref[...] = jnp.dot(x_ref[...], w_ref[...],
                         preferred_element_type=jnp.float32).astype(s_ref.dtype)


def _layer1_kernel(adj_ref, s1_ref, w3_ref, b1_ref, h_ref, s2_ref):
    """h = relu(adj_tile @ S1 + b1); S2_tile = h @ W3 (W3 pre-shifted into high lanes)."""
    h32 = jnp.dot(adj_ref[...], s1_ref[...], preferred_element_type=jnp.float32)
    h32 = jnp.maximum(h32 + b1_ref[...], 0.0)
    h_bf = h32.astype(h_ref.dtype)
    h_ref[...] = h_bf
    # fused "support" matmul of layer 2 (avoids an extra HBM round trip of h)
    s2_ref[...] = jnp.dot(h_bf, w3_ref[...],
                          preferred_element_type=jnp.float32).astype(s2_ref.dtype)


def _layer2_kernel(adj_ref, s2_ref, h_ref, b3_ref, concat_ref, sig_ref):
    """z = adj_tile @ S2 + b3 (lanes [nhid, nhid+nclass)); concat = h + z; sigmoid(z)."""
    z = jnp.dot(adj_ref[...], s2_ref[...], preferred_element_type=jnp.float32) + b3_ref[...]
    # h lives in lanes [0, nhid), z in lanes [nhid, nhid+nclass) -> sum IS torch.cat((h, z), 1)
    concat_ref[...] = h_ref[...].astype(jnp.float32) + z
    # exact sigmoid: true divide handles exp overflow/underflow limits correctly, stays in [0,1]
    sig_ref[...] = 1.0 / (1.0 + jnp.exp(-z))


# ------------------------------ Host wrapper -------------------------------- #

def gcn_forward(x, adj, params):
    """Equivalent of GCN.forward (eval mode). Returns (sigmoid(gc3), feat, concat)."""
    (w1, b1), (w3, b3) = params["gc1"], params["gc3"]
    n, nfeat = x.shape
    nhid = w1.shape[1]
    nclass = w3.shape[1]
    assert nfeat <= LANE and nhid <= LANE and nhid + nclass <= LANE

    n_pad = ((n + LANE - 1) // LANE) * LANE          # lane-dense adj tiles (contraction dim)
    tm = _pick_tile_rows(n_pad)
    nrt = n_pad // tm
    bf16, f32 = jnp.bfloat16, jnp.float32

    # Pad + cast everything once on the wrapper side.
    x_pad = jnp.zeros((n_pad, LANE), bf16).at[:n, :nfeat].set(x.astype(bf16))
    adj_pad = jnp.zeros((n_pad, n_pad), bf16).at[:n, :n].set(adj.astype(bf16))
    w1_pad = jnp.zeros((LANE, LANE), bf16).at[:nfeat, :nhid].set(w1.astype(bf16))
    # W3 / b3 shifted so logits land right after feat along the lane axis.
    w3_pad = jnp.zeros((LANE, LANE), bf16).at[:nhid, nhid:nhid + nclass].set(w3.astype(bf16))
    b1_pad = jnp.zeros((1, LANE), f32).at[0, :nhid].set(b1.astype(f32))
    b3_pad = jnp.zeros((1, LANE), f32).at[0, nhid:nhid + nclass].set(b3.astype(f32))

    cparams = pltpu.CompilerParams(dimension_semantics=("parallel",),
                                   vmem_limit_bytes=VMEM_LIMIT)

    row_spec = pl.BlockSpec((tm, LANE), lambda i: (i, 0))          # row-tiled (TM, 128)
    adj_spec = pl.BlockSpec((tm, n_pad), lambda i: (i, 0))         # adj row slab
    res_spec = pl.BlockSpec((n_pad, LANE), lambda i: (0, 0))       # resident support matrix
    w_spec = pl.BlockSpec((LANE, LANE), lambda i: (0, 0))          # resident weights
    b_spec = pl.BlockSpec((1, LANE), lambda i: (0, 0))             # resident bias row

    # ---- pass A: S1 = X @ W1 (computed once, never recomputed per adj tile) ----
    s1 = pl.pallas_call(
        _support_kernel,
        out_shape=jax.ShapeDtypeStruct((n_pad, LANE), bf16),
        grid=(nrt,),
        in_specs=[row_spec, w_spec],
        out_specs=row_spec,
        compiler_params=cparams,
        cost_estimate=pl.CostEstimate(flops=2 * n_pad * LANE * LANE,
                                      transcendentals=0,
                                      bytes_accessed=2 * (2 * n_pad * LANE + LANE * LANE)),
    )(x_pad, w1_pad)

    # ---- pass B: h = relu(adj @ S1 + b1);  S2 = h @ W3 (fused) ----
    h_bf, s2 = pl.pallas_call(
        _layer1_kernel,
        out_shape=(jax.ShapeDtypeStruct((n_pad, LANE), bf16),
                   jax.ShapeDtypeStruct((n_pad, LANE), bf16)),
        grid=(nrt,),
        in_specs=[adj_spec, res_spec, w_spec, b_spec],
        out_specs=(row_spec, row_spec),
        compiler_params=cparams,
        cost_estimate=pl.CostEstimate(
            flops=2 * n_pad * n_pad * LANE + 2 * n_pad * LANE * LANE + 2 * n_pad * LANE,
            transcendentals=0,
            bytes_accessed=2 * (n_pad * n_pad + 3 * n_pad * LANE + LANE * LANE)),
    )(adj_pad, s1, w3_pad, b1_pad)

    # ---- pass C: z = adj @ S2 + b3;  concat = h + z;  sigmoid(z) ----
    concat_pad, sig_pad = pl.pallas_call(
        _layer2_kernel,
        out_shape=(jax.ShapeDtypeStruct((n_pad, LANE), f32),
                   jax.ShapeDtypeStruct((n_pad, LANE), f32)),
        grid=(nrt,),
        in_specs=[adj_spec, res_spec, row_spec, b_spec],
        out_specs=(row_spec, row_spec),
        compiler_params=cparams,
        cost_estimate=pl.CostEstimate(
            flops=2 * n_pad * n_pad * LANE + 4 * n_pad * LANE,
            transcendentals=n_pad * LANE,
            bytes_accessed=2 * (n_pad * n_pad + 2 * n_pad * LANE) + 8 * n_pad * LANE),
    )(adj_pad, s2, h_bf, b3_pad)

    feat = concat_pad[:n, :nhid]
    concat = concat_pad[:n, :nhid + nclass]          # torch.cat((feat, logits), 1)
    sig = sig_pad[:n, nhid:nhid + nclass]
    return sig, feat, concat


# ------------------------------ Parameter init ----------------------------- #

def init_gc_params(key, in_features, out_features):
    # matches GraphConvolution.reset_parameters: U(-stdv, stdv), stdv = 1/sqrt(out)
    stdv = 1.0 / math.sqrt(out_features)
    kw, kb = jax.random.split(key)
    w = jax.random.uniform(kw, (in_features, out_features),
                           minval=-stdv, maxval=stdv, dtype=jnp.float32)
    b = jax.random.uniform(kb, (out_features,),
                           minval=-stdv, maxval=stdv, dtype=jnp.float32)
    return w, b


def _reference_forward(x, adj, params):
    (w1, b1), (w3, b3) = params["gc1"], params["gc3"]
    h = jnp.maximum(adj @ (x @ w1) + b1, 0.0)
    z = adj @ (h @ w3) + b3
    return jax.nn.sigmoid(z), h, jnp.concatenate([h, z], axis=1)


# ---------------------------------- main ----------------------------------- #

if __name__ == "__main__":
    N, NFEAT, NHID, NCLASS = 16, 32, 32, 8

    key = jax.random.PRNGKey(0)
    kx, kadj, k1, k2, k3, klin = jax.random.split(key, 6)

    # deterministic synthetic inputs
    x = jax.random.normal(kx, (N, NFEAT), dtype=jnp.float32)
    # symmetric adjacency with self loops, row-normalized (typical GCN input)
    a = (jax.random.uniform(kadj, (N, N)) < 0.3).astype(jnp.float32)
    a = jnp.maximum(a, a.T) + jnp.eye(N, dtype=jnp.float32)
    adj = a / jnp.sum(a, axis=1, keepdims=True)

    params = {
        "gc1": init_gc_params(k1, NFEAT, NHID),
        "gc2": init_gc_params(k2, NHID, NHID),      # unused in forward (parity with torch module)
        "gc3": init_gc_params(k3, NHID, NCLASS),
        # nn.Linear(nclass, 1) is also unused in forward; initialized for parity
        "linear_w": jax.random.uniform(klin, (NCLASS, 1),
                                       minval=-1.0 / math.sqrt(NCLASS),
                                       maxval=1.0 / math.sqrt(NCLASS),
                                       dtype=jnp.float32),
    }

    fwd = jax.jit(gcn_forward)
    sig, feat, concat = fwd(x, adj, params)
    jax.block_until_ready((sig, feat, concat))

    assert sig.shape == (N, NCLASS)
    assert feat.shape == (N, NHID)
    assert concat.shape == (N, NHID + NCLASS)

    # numerical check against a pure-JAX f32 reference (kernel path uses bf16 matmul inputs)
    sig_ref, feat_ref, concat_ref = _reference_forward(x, adj, params)
    assert bool(jnp.allclose(feat, feat_ref, rtol=2e-2, atol=2e-2))
    assert bool(jnp.allclose(concat, concat_ref, rtol=2e-2, atol=2e-2))
    assert bool(jnp.allclose(sig, sig_ref, rtol=2e-2, atol=2e-2))
    assert bool(jnp.all(sig >= 0.0)) and bool(jnp.all(sig <= 1.0))

    print("KERNEL_OK")
</pallas_src>

<mosaic_0001>
module attributes {stable_mosaic.version = 11 : i64} {
  func.func @_support_kernel(%arg0: i32, %arg1: memref<128x128xbf16, #tpu.memory_space<vmem>>, %arg2: memref<128x128xbf16, #tpu.memory_space<vmem>>, %arg3: memref<128x128xbf16, #tpu.memory_space<vmem>>) attributes {dimension_semantics = [#tpu.dimension_semantics<parallel>], iteration_bounds = array<i64: 1>, scalar_prefetch = 0 : i64, scratch_operands = 0 : i64, tpu.core_type = #tpu.core_type<tc>, window_params = [{transform_indices = @transform_0, window_bounds = array<i64: 128, 128>}, {pipeline_mode = #tpu.pipeline_mode<synchronous>, transform_indices = @transform_1, window_bounds = array<i64: 128, 128>}, {transform_indices = @transform_2, window_bounds = array<i64: 128, 128>}]} {
    %c0 = arith.constant 0 : index
    %c0_0 = arith.constant 0 : index
    %0 = vector.load %arg1[%c0, %c0_0] : memref<128x128xbf16, #tpu.memory_space<vmem>>, vector<128x128xbf16>
    %c0_1 = arith.constant 0 : index
    %c0_2 = arith.constant 0 : index
    %1 = vector.load %arg2[%c0_1, %c0_2] : memref<128x128xbf16, #tpu.memory_space<vmem>>, vector<128x128xbf16>
    %cst = arith.constant dense<0.000000e+00> : vector<128x128xf32>
    %2 = tpu.matmul %0, %1, %cst {dimension_numbers = #tpu.dot_dimension_numbers<[1], [0], [0], [1], [0, 0, 1, 1], [], []>} : vector<128x128xbf16>, vector<128x128xbf16>, vector<128x128xf32> -> vector<128x128xf32>
    %3 = arith.truncf %2 : vector<128x128xf32> to vector<128x128xbf16>
    %c0_3 = arith.constant 0 : index
    %c0_4 = arith.constant 0 : index
    %4 = vector.load %arg3[%c0_3, %c0_4] : memref<128x128xbf16, #tpu.memory_space<vmem>>, vector<128x128xbf16>
    tpu.vector_store %arg3[%c0_3, %c0_4], %3 {strides = array<i32>} : memref<128x128xbf16, #tpu.memory_space<vmem>>, vector<128x128xbf16>,
    return
  }
  func.func @transform_0(%arg0: i32) -> (i32, i32) {
    %c0_i32 = arith.constant 0 : i32
    %c0_i32_0 = arith.constant 0 : i32
    return %arg0, %c0_i32 : i32, i32
  }
  func.func @transform_1(%arg0: i32) -> (i32, i32) {
    %c0_i32 = arith.constant 0 : i32
    %c0_i32_0 = arith.constant 0 : i32
    %c0_i32_1 = arith.constant 0 : i32
    return %c0_i32, %c0_i32_0 : i32, i32
  }
  func.func @transform_2(%arg0: i32) -> (i32, i32) {
    %c0_i32 = arith.constant 0 : i32
    %c0_i32_0 = arith.constant 0 : i32
    return %arg0, %c0_i32 : i32, i32
  }
}

module attributes {stable_mosaic.version = 11 : i64} {
  func.func @_layer1_kernel(%arg0: i32, %arg1: memref<128x128xbf16, #tpu.memory_space<vmem>>, %arg2: memref<128x128xbf16, #tpu.memory_space<vmem>>, %arg3: memref<128x128xbf16, #tpu.memory_space<vmem>>, %arg4: memref<1x128xf32, #tpu.memory_space<vmem>>, %arg5: memref<128x128xbf16, #tpu.memory_space<vmem>>, %arg6: memref<128x128xbf16, #tpu.memory_space<vmem>>) attributes {dimension_semantics = [#tpu.dimension_semantics<parallel>], iteration_bounds = array<i64: 1>, scalar_prefetch = 0 : i64, scratch_operands = 0 : i64, tpu.core_type = #tpu.core_type<tc>, window_params = [{transform_indices = @transform_0, window_bounds = array<i64: 128, 128>}, {pipeline_mode = #tpu.pipeline_mode<synchronous>, transform_indices = @transform_1, window_bounds = array<i64: 128, 128>}, {pipeline_mode = #tpu.pipeline_mode<synchronous>, transform_indices = @transform_2, window_bounds = array<i64: 128, 128>}, {pipeline_mode = #tpu.pipeline_mode<synchronous>, transform_indices = @transform_3, window_bounds = array<i64: 1, 128>}, {transform_indices = @transform_4, window_bounds = array<i64: 128, 128>}, {transform_indices = @transform_5, window_bounds = array<i64: 128, 128>}]} {
    %c0 = arith.constant 0 : index
    %c0_0 = arith.constant 0 : index
    %0 = vector.load %arg1[%c0, %c0_0] : memref<128x128xbf16, #tpu.memory_space<vmem>>, vector<128x128xbf16>
    %c0_1 = arith.constant 0 : index
    %c0_2 = arith.constant 0 : index
    %1 = vector.load %arg2[%c0_1, %c0_2] : memref<128x128xbf16, #tpu.memory_space<vmem>>, vector<128x128xbf16>
    %cst = arith.constant dense<0.000000e+00> : vector<128x128xf32>
    %2 = tpu.matmul %0, %1, %cst {dimension_numbers = #tpu.dot_dimension_numbers<[1], [0], [0], [1], [0, 0, 1, 1], [], []>} : vector<128x128xbf16>, vector<128x128xbf16>, vector<128x128xf32> -> vector<128x128xf32>
    %c0_3 = arith.constant 0 : index
    %c0_4 = arith.constant 0 : index
    %3 = vector.load %arg4[%c0_3, %c0_4] : memref<1x128xf32, #tpu.memory_space<vmem>>, vector<1x128xf32>
    %4 = vector.broadcast %3 : vector<1x128xf32> to vector<128x128xf32>
    %5 = arith.addf %2, %4 : vector<128x128xf32>
    %cst_5 = arith.constant 0.000000e+00 : f32
    %6 = vector.broadcast %cst_5 : f32 to vector<128x128xf32>
    %7 = arith.maximumf %5, %6 : vector<128x128xf32>
    %8 = arith.truncf %7 : vector<128x128xf32> to vector<128x128xbf16>
    %c0_6 = arith.constant 0 : index
    %c0_7 = arith.constant 0 : index
    %9 = vector.load %arg5[%c0_6, %c0_7] : memref<128x128xbf16, #tpu.memory_space<vmem>>, vector<128x128xbf16>
    tpu.vector_store %arg5[%c0_6, %c0_7], %8 {strides = array<i32>} : memref<128x128xbf16, #tpu.memory_space<vmem>>, vector<128x128xbf16>,
    %c0_8 = arith.constant 0 : index
    %c0_9 = arith.constant 0 : index
    %10 = vector.load %arg3[%c0_8, %c0_9] : memref<128x128xbf16, #tpu.memory_space<vmem>>, vector<128x128xbf16>
    %cst_10 = arith.constant dense<0.000000e+00> : vector<128x128xf32>
    %11 = tpu.matmul %8, %10, %cst_10 {dimension_numbers = #tpu.dot_dimension_numbers<[1], [0], [0], [1], [0, 0, 1, 1], [], []>} : vector<128x128xbf16>, vector<128x128xbf16>, vector<128x128xf32> -> vector<128x128xf32>
    %12 = arith.truncf %11 : vector<128x128xf32> to vector<128x128xbf16>
    %c0_11 = arith.constant 0 : index
    %c0_12 = arith.constant 0 : index
    %13 = vector.load %arg6[%c0_11, %c0_12] : memref<128x128xbf16, #tpu.memory_space<vmem>>, vector<128x128xbf16>
    tpu.vector_store %arg6[%c0_11, %c0_12], %12 {strides = array<i32>} : memref<128x128xbf16, #tpu.memory_space<vmem>>, vector<128x128xbf16>,
    return
  }
  func.func @transform_0(%arg0: i32) -> (i32, i32) {
    %c0_i32 = arith.constant 0 : i32
    %c0_i32_0 = arith.constant 0 : i32
    return %arg0, %c0_i32 : i32, i32
  }
  func.func @transform_1(%arg0: i32) -> (i32, i32) {
    %c0_i32 = arith.constant 0 : i32
    %c0_i32_0 = arith.constant 0 : i32
    %c0_i32_1 = arith.constant 0 : i32
    return %c0_i32, %c0_i32_0 : i32, i32
  }
  func.func @transform_2(%arg0: i32) -> (i32, i32) {
    %c0_i32 = arith.constant 0 : i32
    %c0_i32_0 = arith.constant 0 : i32
    %c0_i32_1 = arith.constant 0 : i32
    return %c0_i32, %c0_i32_0 : i32, i32
  }
  func.func @transform_3(%arg0: i32) -> (i32, i32) {
    %c0_i32 = arith.constant 0 : i32
    %c0_i32_0 = arith.constant 0 : i32
    %c0_i32_1 = arith.constant 0 : i32
    return %c0_i32, %c0_i32_0 : i32, i32
  }
  func.func @transform_4(%arg0: i32) -> (i32, i32) {
    %c0_i32 = arith.constant 0 : i32
    %c0_i32_0 = arith.constant 0 : i32
    return %arg0, %c0_i32 : i32, i32
  }
  func.func @transform_5(%arg0: i32) -> (i32, i32) {
    %c0_i32 = arith.constant 0 : i32
    %c0_i32_0 = arith.constant 0 : i32
    return %arg0, %c0_i32 : i32, i32
  }
}

module attributes {stable_mosaic.version = 11 : i64} {
  func.func @_layer2_kernel(%arg0: i32, %arg1: memref<128x128xbf16, #tpu.memory_space<vmem>>, %arg2: memref<128x128xbf16, #tpu.memory_space<vmem>>, %arg3: memref<128x128xbf16, #tpu.memory_space<vmem>>, %arg4: memref<1x128xf32, #tpu.memory_space<vmem>>, %arg5: memref<128x128xf32, #tpu.memory_space<vmem>>, %arg6: memref<128x128xf32, #tpu.memory_space<vmem>>) attributes {dimension_semantics = [#tpu.dimension_semantics<parallel>], iteration_bounds = array<i64: 1>, scalar_prefetch = 0 : i64, scratch_operands = 0 : i64, tpu.core_type = #tpu.core_type<tc>, window_params = [{transform_indices = @transform_0, window_bounds = array<i64: 128, 128>}, {pipeline_mode = #tpu.pipeline_mode<synchronous>, transform_indices = @transform_1, window_bounds = array<i64: 128, 128>}, {transform_indices = @transform_2, window_bounds = array<i64: 128, 128>}, {pipeline_mode = #tpu.pipeline_mode<synchronous>, transform_indices = @transform_3, window_bounds = array<i64: 1, 128>}, {transform_indices = @transform_4, window_bounds = array<i64: 128, 128>}, {transform_indices = @transform_5, window_bounds = array<i64: 128, 128>}]} {
    %c0 = arith.constant 0 : index
    %c0_0 = arith.constant 0 : index
    %0 = vector.load %arg1[%c0, %c0_0] : memref<128x128xbf16, #tpu.memory_space<vmem>>, vector<128x128xbf16>
    %c0_1 = arith.constant 0 : index
    %c0_2 = arith.constant 0 : index
    %1 = vector.load %arg2[%c0_1, %c0_2] : memref<128x128xbf16, #tpu.memory_space<vmem>>, vector<128x128xbf16>
    %cst = arith.constant dense<0.000000e+00> : vector<128x128xf32>
    %2 = tpu.matmul %0, %1, %cst {dimension_numbers = #tpu.dot_dimension_numbers<[1], [0], [0], [1], [0, 0, 1, 1], [], []>} : vector<128x128xbf16>, vector<128x128xbf16>, vector<128x128xf32> -> vector<128x128xf32>
    %c0_3 = arith.constant 0 : index
    %c0_4 = arith.constant 0 : index
    %3 = vector.load %arg4[%c0_3, %c0_4] : memref<1x128xf32, #tpu.memory_space<vmem>>, vector<1x128xf32>
    %4 = vector.broadcast %3 : vector<1x128xf32> to vector<128x128xf32>
    %5 = arith.addf %2, %4 : vector<128x128xf32>
    %c0_5 = arith.constant 0 : index
    %c0_6 = arith.constant 0 : index
    %6 = vector.load %arg3[%c0_5, %c0_6] : memref<128x128xbf16, #tpu.memory_space<vmem>>, vector<128x128xbf16>
    %7 = arith.extf %6 : vector<128x128xbf16> to vector<128x128xf32>
    %8 = arith.addf %7, %5 : vector<128x128xf32>
    %c0_7 = arith.constant 0 : index
    %c0_8 = arith.constant 0 : index
    %9 = vector.load %arg5[%c0_7, %c0_8] : memref<128x128xf32, #tpu.memory_space<vmem>>, vector<128x128xf32>
    tpu.vector_store %arg5[%c0_7, %c0_8], %8 {strides = array<i32>} : memref<128x128xf32, #tpu.memory_space<vmem>>, vector<128x128xf32>,
    %cst_9 = arith.constant 0.000000e+00 : f32
    %10 = vector.broadcast %cst_9 : f32 to vector<128x128xf32>
    %11 = arith.subf %10, %5 : vector<128x128xf32>
    %12 = math.exp %11 : vector<128x128xf32>
    %cst_10 = arith.constant 1.000000e+00 : f32
    %13 = vector.broadcast %cst_10 : f32 to vector<128x128xf32>
    %14 = arith.addf %13, %12 : vector<128x128xf32>
    %cst_11 = arith.constant 1.000000e+00 : f32
    %15 = vector.broadcast %cst_11 : f32 to vector<128x128xf32>
    %16 = arith.divf %15, %14 : vector<128x128xf32>
    %c0_12 = arith.constant 0 : index
    %c0_13 = arith.constant 0 : index
    %17 = vector.load %arg6[%c0_12, %c0_13] : memref<128x128xf32, #tpu.memory_space<vmem>>, vector<128x128xf32>
    tpu.vector_store %arg6[%c0_12, %c0_13], %16 {strides = array<i32>} : memref<128x128xf32, #tpu.memory_space<vmem>>, vector<128x128xf32>,
    return
  }
  func.func @transform_0(%arg0: i32) -> (i32, i32) {
    %c0_i32 = arith.constant 0 : i32
    %c0_i32_0 = arith.constant 0 : i32
    return %arg0, %c0_i32 : i32, i32
  }
  func.func @transform_1(%arg0: i32) -> (i32, i32) {
    %c0_i32 = arith.constant 0 : i32
    %c0_i32_0 = arith.constant 0 : i32
    %c0_i32_1 = arith.constant 0 : i32
    return %c0_i32, %c0_i32_0 : i32, i32
  }
  func.func @transform_2(%arg0: i32) -> (i32, i32) {
    %c0_i32 = arith.constant 0 : i32
    %c0_i32_0 = arith.constant 0 : i32
    return %arg0, %c0_i32 : i32, i32
  }
  func.func @transform_3(%arg0: i32) -> (i32, i32) {
    %c0_i32 = arith.constant 0 : i32
    %c0_i32_0 = arith.constant 0 : i32
    %c0_i32_1 = arith.constant 0 : i32
    return %c0_i32, %c0_i32_0 : i32, i32
  }
  func.func @transform_4(%arg0: i32) -> (i32, i32) {
    %c0_i32 = arith.constant 0 : i32
    %c0_i32_0 = arith.constant 0 : i32
    return %arg0, %c0_i32 : i32, i32
  }
  func.func @transform_5(%arg0: i32) -> (i32, i32) {
    %c0_i32 = arith.constant 0 : i32
    %c0_i32_0 = arith.constant 0 : i32
    return %arg0, %c0_i32 : i32, i32
  }
}

</mosaic_0001>

<bundles_post_ra>
// kernel: gcn_forward.3
= control target key start
LH: loop header
LB: loop body
LE: loop exit
PB: predicated region body
PF: predicated region fallthrough
CT: control target
= control target key end

     0   :  { %s583_s1 = inlined_call_operand.vmem [shape: bf16[128,128], index: 1, kind: input, shape index: {}]   ;;  %s584_s0 = inlined_call_operand.vmem [shape: bf16[128,128], index: 0, kind: input, shape index: {}]   ;;  %s585_s2 = inlined_call_operand.vmem [shape: bf16[128,128], index: 2, kind: output, shape index: {}]  }
   0x1   :  { %v480_v0 = vld [vmem:[%s583_s1] sm:$0xff]   ;;  %v481_v1 = vld [vmem:[%s583_s1 + $0x8] sm:$0xff]   ;;  %v482_v2 = vld [vmem:[%s583_s1 + $0x10] sm:$0xff]  }
   0x2   :  { %432 = vmatprep.subr.bf16.mxu0 %v480_v0  ;;  %464 = vmatprep.subr.bf16.mxu1 %v480_v0  ;;  %v483_v3 = vld [vmem:[%s583_s1 + $0x18] sm:$0xff]   ;;  %v488_v4 = vld [vmem:[%s584_s0] sm:$0xff]   ;;  %v485_v7 = vld [vmem:[%s583_s1 + $0x28] sm:$0xff]  }
   0x3   :  { %433 = vmatpush3.bf16.msra.mxu0 %v480_v0  ;;  %472 = vmatpush3.bf16.msra.mxu1 %v480_v0  ;;  %v489_v5 = vld [vmem:[%s584_s0 + $0x20] sm:$0xff]   ;;  %v486_v8 = vld [vmem:[%s583_s1 + $0x30] sm:$0xff]   ;;  %v487_v9 = vld [vmem:[%s583_s1 + $0x38] sm:$0xff]  }
   0x4   :  { %434 = vmatprep.subr.bf16.mxu0 %v481_v1  ;;  %465 = vmatprep.subr.bf16.mxu1 %v481_v1  ;;  %v484_v6 = vld [vmem:[%s583_s1 + $0x20] sm:$0xff]   ;;  %v490_v10 = vld [vmem:[%s584_s0 + $0x8] sm:$0xff]   ;;  %v492_v12 = vld [vmem:[%s584_s0 + $0x10] sm:$0xff]  }
   0x5   :  { %448 = vmatprep.mubr.bf16.mxu0 %v488_v4  ;;  %456 = vmatprep.mubr.bf16.mxu1 %v489_v5  ;;  %v491_v11 = vld [vmem:[%s584_s0 + $0x28] sm:$0xff]   ;;  %v493_v13 = vld [vmem:[%s584_s0 + $0x30] sm:$0xff]   ;;  %v494_v14 = vld [vmem:[%s584_s0 + $0x18] sm:$0xff]  }
   0x6   :  { %v495_v15 = vld [vmem:[%s584_s0 + $0x38] sm:$0xff]  }
   0x7   :  { %435 = vmatpush3.bf16.msra.mxu0 %v481_v1  ;;  %473 = vmatpush3.bf16.msra.mxu1 %v481_v1 }
   0x8   :  { %436 = vmatprep.subr.bf16.mxu0 %v482_v2  ;;  %466 = vmatprep.subr.bf16.mxu1 %v482_v2 }
   0xb   :  { %437 = vmatpush3.bf16.msra.mxu0 %v482_v2  ;;  %474 = vmatpush3.bf16.msra.mxu1 %v482_v2 }
   0xc   :  { %438 = vmatprep.subr.bf16.mxu0 %v483_v3  ;;  %467 = vmatprep.subr.bf16.mxu1 %v483_v3 }
   0xf   :  { %439 = vmatpush3.bf16.msra.mxu0 %v483_v3  ;;  %475 = vmatpush3.bf16.msra.mxu1 %v483_v3 }
  0x10   :  { %440 = vmatprep.subr.bf16.mxu0 %v484_v6  ;;  %468 = vmatprep.subr.bf16.mxu1 %v484_v6 }
  0x13   :  { %441 = vmatpush3.bf16.msra.mxu0 %v484_v6  ;;  %476 = vmatpush3.bf16.msra.mxu1 %v484_v6 }
  0x14   :  { %442 = vmatprep.subr.bf16.mxu0 %v485_v7  ;;  %469 = vmatprep.subr.bf16.mxu1 %v485_v7 }
  0x17   :  { %443 = vmatpush3.bf16.msra.mxu0 %v485_v7  ;;  %477 = vmatpush3.bf16.msra.mxu1 %v485_v7 }
  0x18   :  { %444 = vmatprep.subr.bf16.mxu0 %v486_v8  ;;  %470 = vmatprep.subr.bf16.mxu1 %v486_v8 }
  0x1b   :  { %445 = vmatpush3.bf16.msra.mxu0 %v486_v8  ;;  %478 = vmatpush3.bf16.msra.mxu1 %v486_v8 }
  0x1c   :  { %446 = vmatprep.subr.bf16.mxu0 %v487_v9  ;;  %471 = vmatprep.subr.bf16.mxu1 %v487_v9 }
  0x1f   :  { %447 = vmatpush3.bf16.msra.mxu0 %v487_v9  ;;  %479 = vmatpush3.bf16.msra.mxu1 %v487_v9 }
  0x22   :  { %449 = vmatmul.mubr.bf16.vlgmr.msra.gmra.mrb[0].mxu0 %v490_v10  ;;  %457 = vmatmul.mubr.bf16.vlgmr.msra.gmra.mrb[0].mxu1 %v491_v11 }
  0x23   :  { %452 = vmatprep.mubr.bf16.mxu0 %v492_v12  ;;  %460 = vmatprep.mubr.bf16.mxu1 %v493_v13 }
  0x2a   :  { %453 = vmatmul.mubr.bf16.gmra.mrb[4].mxu0 %v494_v14  ;;  %461 = vmatmul.mubr.bf16.gmra.mrb[4].mxu1 %v495_v15 }
  0xf5   :  { %v450_v16 = vpop.f32.mrb[0].mxu0  ;;  %v458_v17 = vpop.f32.mrb[0].mxu1 }
  0xf6   :  { %v174_v18 = vpop.f32.mrb[1].mxu0  ;;  %v206_v19 = vpop.f32.mrb[1].mxu1 }
  0xf7   :  { %v451_v20 = vpop.f32.mrb[2].mxu0  ;;  %v459_v21 = vpop.f32.mrb[2].mxu1 }
  0xf8   :  { %v377_v22 = vpack.c.bf16 %v451_v20, %v450_v16  ;;  %v397_v23 = vpack.c.bf16 %v459_v21, %v458_v17  ;;  %v177_v24 = vpop.f32.mrb[3].mxu0  ;;  %v209_v25 = vpop.f32.mrb[3].mxu1 }
  0xf9   :  { %v372_v26 = vpack.c.bf16 %v177_v24, %v174_v18  ;;  %v392_v27 = vpack.c.bf16 %v209_v25, %v206_v19 }
  0xfa   :  { %409 = vst [vmem:[%s585_s2 + $0x8] sm:$0xff] %v377_v22   ;;  %413 = vst [vmem:[%s585_s2 + $0x28] sm:$0xff] %v397_v23  }
  0xfb   :  { %373 = vst [vmem:[%s585_s2] sm:$0xff] %v372_v26   ;;  %412 = vst [vmem:[%s585_s2 + $0x20] sm:$0xff] %v392_v27  }
  0xfd   :  { %v454_v28 = vpop.f32.mrb[4].mxu0  ;;  %v462_v29 = vpop.f32.mrb[4].mxu1 }
  0xfe   :  { %v190_v30 = vpop.f32.mrb[5].mxu0  ;;  %v222_v31 = vpop.f32.mrb[5].mxu1 }
  0xff   :  { %v455_v32 = vpop.f32.mrb[6].mxu0  ;;  %v463_v33 = vpop.f32.mrb[6].mxu1 }
 0x100   :  { %v387_v34 = vpack.c.bf16 %v455_v32, %v454_v28  ;;  %v407_v35 = vpack.c.bf16 %v463_v33, %v462_v29  ;;  %v193_v36 = vpop.f32.mrb[7].mxu0  ;;  %v225_v37 = vpop.f32.mrb[7].mxu1 }
 0x101   :  { %v382_v38 = vpack.c.bf16 %v193_v36, %v190_v30  ;;  %v402_v39 = vpack.c.bf16 %v225_v37, %v222_v31 }
 0x102   :  { %411 = vst [vmem:[%s585_s2 + $0x18] sm:$0xff] %v387_v34   ;;  %415 = vst [vmem:[%s585_s2 + $0x38] sm:$0xff] %v407_v35  }
 0x103   :  { %410 = vst [vmem:[%s585_s2 + $0x10] sm:$0xff] %v382_v38   ;;  %414 = vst [vmem:[%s585_s2 + $0x30] sm:$0xff] %v402_v39  }

// kernel: gcn_forward.4
= control target key start
LH: loop header
LB: loop body
LE: loop exit
PB: predicated region body
PF: predicated region fallthrough
CT: control target
= control target key end

     0   :  { %s1071_s1 = inlined_call_operand.vmem [shape: bf16[128,128], index: 1, kind: input, shape index: {}]   ;;  %s1072_s0 = inlined_call_operand.vmem [shape: bf16[128,128], index: 0, kind: input, shape index: {}]   ;;  %s1073_s2 = inlined_call_operand.vmem [shape: bf16[128,128], index: 2, kind: input, shape index: {}]   ;;  %s1074_s3 = inlined_call_operand.vmem [shape: f32[1,128], index: 3, kind: input, shape index: {}]   ;;  %s1075_s4 = inlined_call_operand.vmem [shape: bf16[128,128], index: 4, kind: output, shape index: {0}]   ;;  %s1076_s5 = inlined_call_operand.vmem [shape: bf16[128,128], index: 5, kind: output, shape index: {1}]  }
   0x1   :  { %v876_v0 = vld [vmem:[%s1071_s1] sm:$0xff]   ;;  %v877_v1 = vld [vmem:[%s1071_s1 + $0x8] sm:$0xff]   ;;  %v878_v2 = vld [vmem:[%s1071_s1 + $0x10] sm:$0xff]  }
   0x2   :  { %812 = vmatprep.subr.bf16.mxu0 %v876_v0  ;;  %v879_v3 = vld [vmem:[%s1071_s1 + $0x18] sm:$0xff]   ;;  %v884_v4 = vld [vmem:[%s1072_s0] sm:$0xff]   ;;  %v881_v6 = vld [vmem:[%s1071_s1 + $0x28] sm:$0xff]  }
   0x3   :  { %813 = vmatpush3.bf16.msra.mxu0 %v876_v0  ;;  %828 = vmatprep.mubr.bf16.mxu0 %v884_v4  ;;  %v880_v5 = vld [vmem:[%s1071_s1 + $0x20] sm:$0xff]   ;;  %v893_v8 = vld [vmem:[%s1073_s2 + $0x8] sm:$0xff]   ;;  %v882_v9 = vld [vmem:[%s1071_s1 + $0x30] sm:$0xff]  }
   0x4   :  { %814 = vmatprep.subr.bf16.mxu0 %v877_v1  ;;  %v892_v7 = vld [vmem:[%s1073_s2] sm:$0xff]   ;;  %v894_v10 = vld [vmem:[%s1073_s2 + $0x10] sm:$0xff]   ;;  %v883_v11 = vld [vmem:[%s1071_s1 + $0x38] sm:$0xff]  }
   0x5   :  { %844 = vmatprep.subr.bf16.mxu1 %v892_v7  ;;  %v895_v12 = vld [vmem:[%s1073_s2 + $0x18] sm:$0xff]   ;;  %v896_v13 = vld [vmem:[%s1073_s2 + $0x20] sm:$0xff]   ;;  %v885_v14 = vld [vmem:[%s1072_s0 + $0x8] sm:$0xff]  }
   0x6   :  { %845 = vmatpush3.bf16.msra.mxu1 %v892_v7  ;;  %v886_v15 = vld [vmem:[%s1072_s0 + $0x10] sm:$0xff]   ;;  %v897_v16 = vld [vmem:[%s1073_s2 + $0x28] sm:$0xff]   ;;  %v887_v17 = vld [vmem:[%s1072_s0 + $0x18] sm:$0xff]  }
   0x7   :  { %815 = vmatpush3.bf16.msra.mxu0 %v877_v1  ;;  %846 = vmatprep.subr.bf16.mxu1 %v893_v8  ;;  %v888_v18 = vld [vmem:[%s1072_s0 + $0x20] sm:$0xff]   ;;  %v889_v19 = vld [vmem:[%s1072_s0 + $0x28] sm:$0xff]   ;;  %v890_v20 = vld [vmem:[%s1072_s0 + $0x30] sm:$0xff]  }
   0x8   :  { %816 = vmatprep.subr.bf16.mxu0 %v878_v2  ;;  %v891_v21 = vld [vmem:[%s1072_s0 + $0x38] sm:$0xff]   ;;  %v898_v22 = vld [vmem:[%s1073_s2 + $0x30] sm:$0xff]   ;;  %v1005_v24 = vld [vmem:[%s1074_s3] ss:$0 sm:$0xff] }
   0x9   :  { %v899_v23 = vld [vmem:[%s1073_s2 + $0x38] sm:$0xff]  }
   0xa   :  { %847 = vmatpush3.bf16.msra.mxu1 %v893_v8 }
   0xb   :  { %817 = vmatpush3.bf16.msra.mxu0 %v878_v2  ;;  %848 = vmatprep.subr.bf16.mxu1 %v894_v10 }
   0xc   :  { %818 = vmatprep.subr.bf16.mxu0 %v879_v3 }
   0xe   :  { %849 = vmatpush3.bf16.msra.mxu1 %v894_v10 }
   0xf   :  { %819 = vmatpush3.bf16.msra.mxu0 %v879_v3  ;;  %850 = vmatprep.subr.bf16.mxu1 %v895_v12 }
  0x10   :  { %820 = vmatprep.subr.bf16.mxu0 %v880_v5 }
  0x12   :  { %851 = vmatpush3.bf16.msra.mxu1 %v895_v12 }
  0x13   :  { %821 = vmatpush3.bf16.msra.mxu0 %v880_v5  ;;  %852 = vmatprep.subr.bf16.mxu1 %v896_v13 }
  0x14   :  { %822 = vmatprep.subr.bf16.mxu0 %v881_v6 }
  0x16   :  { %853 = vmatpush3.bf16.msra.mxu1 %v896_v13 }
  0x17   :  { %823 = vmatpush3.bf16.msra.mxu0 %v881_v6  ;;  %854 = vmatprep.subr.bf16.mxu1 %v897_v16 }
  0x18   :  { %824 = vmatprep.subr.bf16.mxu0 %v882_v9 }
  0x1a   :  { %855 = vmatpush3.bf16.msra.mxu1 %v897_v16 }
  0x1b   :  { %825 = vmatpush3.bf16.msra.mxu0 %v882_v9  ;;  %856 = vmatprep.subr.bf16.mxu1 %v898_v22 }
  0x1c   :  { %826 = vmatprep.subr.bf16.mxu0 %v883_v11 }
  0x1e   :  { %857 = vmatpush3.bf16.msra.mxu1 %v898_v22 }
  0x1f   :  { %827 = vmatpush3.bf16.msra.mxu0 %v883_v11  ;;  %858 = vmatprep.subr.bf16.mxu1 %v899_v23 }
  0x22   :  { %829 = vmatmul.mubr.bf16.vlgmr.msra.gmra.mrb[0].mxu0 %v885_v14  ;;  %859 = vmatpush3.bf16.msra.mxu1 %v899_v23 }
  0x23   :  { %832 = vmatprep.mubr.bf16.mxu0 %v886_v15 }
  0x2a   :  { %833 = vmatmul.mubr.bf16.gmra.mrb[4].mxu0 %v887_v17 }
  0x2b   :  { %836 = vmatprep.mubr.bf16.mxu0 %v888_v18 }
  0x32   :  { %837 = vmatmul.mubr.bf16.gmra.mrb[8].mxu0 %v889_v19 }
  0x33   :  { %840 = vmatprep.mubr.bf16.mxu0 %v890_v20 }
  0x3a   :  { %841 = vmatmul.mubr.bf16.gmra.mrb[12].mxu0 %v891_v21 }
  0xf5   :  { %v830_v25 = vpop.f32.mrb[0].mxu0 }
  0xf6   :  { %v198_v26 = vadd.f32 %v830_v25, %v1005_v24  ;;  %v189_v27 = vpop.f32.mrb[1].mxu0 }
  0xf7   :  { %v190_v28 = vadd.f32 %v1005_v24, %v189_v27  ;;  %v831_v29 = vpop.f32.mrb[2].mxu0 }
  0xf8   :  { %v201_v30 = vadd.f32 %v831_v29, %v1005_v24  ;;  %v192_v31 = vpop.f32.mrb[3].mxu0  ;;  %v254_v33 = vmax.f32 %v198_v26, 0.0 }
  0xf9   :  { %v193_v32 = vadd.f32 %v1005_v24, %v192_v31  ;;  %v252_v35 = vmax.f32 %v190_v28, 0.0 }
  0xfa   :  { %v255_v34 = vmax.f32 %v201_v30, 0.0 }
  0xfb   :  { %v253_v36 = vmax.f32 %v193_v32, 0.0 }
  0xfc   :  { %v269_v37 = vpack.c.bf16 %v255_v34, %v254_v33 }
  0xfd   :  { %v834_v38 = vpop.f32.mrb[4].mxu0  ;;  %v268_v39 = vpack.c.bf16 %v253_v36, %v252_v35 }
  0xfe   :  { %766 = vst [vmem:[%s1075_s4 + $0x8] sm:$0xff] %v269_v37   ;;  %v214_v40 = vadd.f32 %v834_v38, %v1005_v24  ;;  %v205_v41 = vpop.f32.mrb[5].mxu0 }
  0xff   :  { %v206_v42 = vadd.f32 %v1005_v24, %v205_v41  ;;  %v835_v43 = vpop.f32.mrb[6].mxu0  ;;  %690 = vst [vmem:[%s1075_s4] sm:$0xff] %v268_v39   ;;  %860 = vmatprep.mubr.bf16.mxu1 %v268_v39 }
 0x100   :  { %v217_v44 = vadd.f32 %v835_v43, %v1005_v24  ;;  %v208_v45 = vpop.f32.mrb[7].mxu0  ;;  %861 = vmatmul.mubr.bf16.vlgmr.msra.gmra.mrb[0].mxu1 %v269_v37  ;;  %v258_v47 = vmax.f32 %v214_v40, 0.0 }
 0x101   :  { %v209_v46 = vadd.f32 %v1005_v24, %v208_v45  ;;  %v256_v49 = vmax.f32 %v206_v42, 0.0 }
 0x102   :  { %v259_v48 = vmax.f32 %v217_v44, 0.0 }
 0x103   :  { %v257_v50 = vmax.f32 %v209_v46, 0.0 }
 0x104   :  { %v271_v51 = vpack.c.bf16 %v259_v48, %v258_v47 }
 0x105   :  { %v270_v52 = vpack.c.bf16 %v257_v50, %v256_v49  ;;  %v838_v53 = vpop.f32.mrb[8].mxu0 }
 0x106   :  { %768 = vst [vmem:[%s1075_s4 + $0x18] sm:$0xff] %v271_v51   ;;  %v230_v54 = vadd.f32 %v838_v53, %v1005_v24  ;;  %v221_v55 = vpop.f32.mrb[9].mxu0 }
 0x107   :  { %767 = vst [vmem:[%s1075_s4 + $0x10] sm:$0xff] %v270_v52   ;;  %v222_v56 = vadd.f32 %v1005_v24, %v221_v55  ;;  %v839_v57 = vpop.f32.mrb[10].mxu0  ;;  %864 = vmatprep.mubr.bf16.mxu1 %v270_v52 }
 0x108   :  { %v233_v58 = vadd.f32 %v839_v57, %v1005_v24  ;;  %v224_v59 = vpop.f32.mrb[11].mxu0  ;;  %865 = vmatmul.mubr.bf16.gmra.mrb[4].mxu1 %v271_v51  ;;  %v262_v61 = vmax.f32 %v230_v54, 0.0 }
 0x109   :  { %v225_v60 = vadd.f32 %v1005_v24, %v224_v59  ;;  %v260_v63 = vmax.f32 %v222_v56, 0.0 }
 0x10a   :  { %v263_v62 = vmax.f32 %v233_v58, 0.0 }
 0x10b   :  { %v261_v0 = vmax.f32 %v225_v60, 0.0 }
 0x10c   :  { %v273_v1 = vpack.c.bf16 %v263_v62, %v262_v61 }
 0x10d   :  { %v272_v2 = vpack.c.bf16 %v261_v0, %v260_v63  ;;  %v842_v3 = vpop.f32.mrb[12].mxu0 }
 0x10e   :  { %770 = vst [vmem:[%s1075_s4 + $0x28] sm:$0xff] %v273_v1   ;;  %v246_v4 = vadd.f32 %v842_v3, %v1005_v24  ;;  %v237_v5 = vpop.f32.mrb[13].mxu0 }
 0x10f   :  { %769 = vst [vmem:[%s1075_s4 + $0x20] sm:$0xff] %v272_v2   ;;  %v238_v6 = vadd.f32 %v1005_v24, %v237_v5  ;;  %v843_v7 = vpop.f32.mrb[14].mxu0  ;;  %868 = vmatprep.mubr.bf16.mxu1 %v272_v2 }
 0x110   :  { %v249_v8 = vadd.f32 %v843_v7, %v1005_v24  ;;  %v240_v9 = vpop.f32.mrb[15].mxu0  ;;  %869 = vmatmul.mubr.bf16.gmra.mrb[8].mxu1 %v273_v1  ;;  %v266_v11 = vmax.f32 %v246_v4, 0.0 }
 0x111   :  { %v241_v10 = vadd.f32 %v1005_v24, %v240_v9  ;;  %v264_v13 = vmax.f32 %v238_v6, 0.0 }
 0x112   :  { %v267_v12 = vmax.f32 %v249_v8, 0.0 }
 0x113   :  { %v265_v14 = vmax.f32 %v241_v10, 0.0 }
 0x114   :  { %v275_v15 = vpack.c.bf16 %v267_v12, %v266_v11 }
 0x115   :  { %v274_v16 = vpack.c.bf16 %v265_v14, %v264_v13 }
 0x116   :  { %772 = vst [vmem:[%s1075_s4 + $0x38] sm:$0xff] %v275_v15  }
 0x117   :  { %771 = vst [vmem:[%s1075_s4 + $0x30] sm:$0xff] %v274_v16   ;;  %872 = vmatprep.mubr.bf16.mxu1 %v274_v16 }
 0x118   :  { %873 = vmatmul.mubr.bf16.gmra.mrb[12].mxu1 %v275_v15 }
 0x1d3   :  { %v862_v17 = vpop.f32.mrb[0].mxu1 }
 0x1d4   :  { %v446_v18 = vpop.f32.mrb[1].mxu1 }
 0x1d5   :  { %v863_v19 = vpop.f32.mrb[2].mxu1 }
 0x1d6   :  { %v734_v20 = vpack.c.bf16 %v863_v19, %v862_v17  ;;  %v449_v21 = vpop.f32.mrb[3].mxu1 }
 0x1d7   :  { %v729_v22 = vpack.c.bf16 %v449_v21, %v446_v18 }
 0x1d8   :  { %773 = vst [vmem:[%s1076_s5 + $0x8] sm:$0xff] %v734_v20  }
 0x1d9   :  { %730 = vst [vmem:[%s1076_s5] sm:$0xff] %v729_v22  }
 0x1db   :  { %v866_v23 = vpop.f32.mrb[4].mxu1 }
 0x1dc   :  { %v462_v24 = vpop.f32.mrb[5].mxu1 }
 0x1dd   :  { %v867_v25 = vpop.f32.mrb[6].mxu1 }
 0x1de   :  { %v744_v26 = vpack.c.bf16 %v867_v25, %v866_v23  ;;  %v465_v27 = vpop.f32.mrb[7].mxu1 }
 0x1df   :  { %v739_v28 = vpack.c.bf16 %v465_v27, %v462_v24 }
 0x1e0   :  { %775 = vst [vmem:[%s1076_s5 + $0x18] sm:$0xff] %v744_v26  }
 0x1e1   :  { %774 = vst [vmem:[%s1076_s5 + $0x10] sm:$0xff] %v739_v28  }
 0x1e3   :  { %v870_v29 = vpop.f32.mrb[8].mxu1 }
 0x1e4   :  { %v478_v30 = vpop.f32.mrb[9].mxu1 }
 0x1e5   :  { %v871_v31 = vpop.f32.mrb[10].mxu1 }
 0x1e6   :  { %v754_v32 = vpack.c.bf16 %v871_v31, %v870_v29  ;;  %v481_v33 = vpop.f32.mrb[11].mxu1 }
 0x1e7   :  { %v749_v34 = vpack.c.bf16 %v481_v33, %v478_v30 }
 0x1e8   :  { %777 = vst [vmem:[%s1076_s5 + $0x28] sm:$0xff] %v754_v32  }
 0x1e9   :  { %776 = vst [vmem:[%s1076_s5 + $0x20] sm:$0xff] %v749_v34  }
 0x1eb   :  { %v874_v35 = vpop.f32.mrb[12].mxu1 }
 0x1ec   :  { %v494_v36 = vpop.f32.mrb[13].mxu1 }
 0x1ed   :  { %v875_v37 = vpop.f32.mrb[14].mxu1 }
 0x1ee   :  { %v764_v38 = vpack.c.bf16 %v875_v37, %v874_v35  ;;  %v497_v39 = vpop.f32.mrb[15].mxu1 }
 0x1ef   :  { %v759_v40 = vpack.c.bf16 %v497_v39, %v494_v36 }
 0x1f0   :  { %779 = vst [vmem:[%s1076_s5 + $0x38] sm:$0xff] %v764_v38  }
 0x1f1   :  { %778 = vst [vmem:[%s1076_s5 + $0x30] sm:$0xff] %v759_v40  }

// kernel: gcn_forward.5
= control target key start
LH: loop header
LB: loop body
LE: loop exit
PB: predicated region body
PF: predicated region fallthrough
CT: control target
= control target key end

     0   :  { %s889_s1 = inlined_call_operand.vmem [shape: bf16[128,128], index: 1, kind: input, shape index: {}]   ;;  %s890_s0 = inlined_call_operand.vmem [shape: bf16[128,128], index: 0, kind: input, shape index: {}]   ;;  %s891_s2 = inlined_call_operand.vmem [shape: bf16[128,128], index: 2, kind: input, shape index: {}]   ;;  %s892_s3 = inlined_call_operand.vmem [shape: f32[1,128], index: 3, kind: input, shape index: {}]   ;;  %s893_s4 = inlined_call_operand.vmem [shape: f32[128,128], index: 4, kind: output, shape index: {0}]   ;;  %s894_s5 = inlined_call_operand.vmem [shape: f32[128,128], index: 5, kind: output, shape index: {1}]  }
   0x1   :  { %v556_v0 = vld [vmem:[%s889_s1] sm:$0xff]   ;;  %v557_v1 = vld [vmem:[%s889_s1 + $0x8] sm:$0xff]   ;;  %v558_v2 = vld [vmem:[%s889_s1 + $0x10] sm:$0xff]  }
   0x2   :  { %508 = vmatprep.subr.bf16.mxu0 %v556_v0  ;;  %540 = vmatprep.subr.bf16.mxu1 %v556_v0  ;;  %v559_v3 = vld [vmem:[%s889_s1 + $0x18] sm:$0xff]   ;;  %v564_v4 = vld [vmem:[%s890_s0] sm:$0xff]   ;;  %v561_v7 = vld [vmem:[%s889_s1 + $0x28] sm:$0xff]  }
   0x3   :  { %509 = vmatpush3.bf16.msra.mxu0 %v556_v0  ;;  %548 = vmatpush3.bf16.msra.mxu1 %v556_v0  ;;  %v565_v5 = vld [vmem:[%s890_s0 + $0x20] sm:$0xff]   ;;  %v562_v8 = vld [vmem:[%s889_s1 + $0x30] sm:$0xff]   ;;  %v563_v9 = vld [vmem:[%s889_s1 + $0x38] sm:$0xff]  }
   0x4   :  { %510 = vmatprep.subr.bf16.mxu0 %v557_v1  ;;  %541 = vmatprep.subr.bf16.mxu1 %v557_v1  ;;  %v560_v6 = vld [vmem:[%s889_s1 + $0x20] sm:$0xff]   ;;  %v566_v10 = vld [vmem:[%s890_s0 + $0x8] sm:$0xff]   ;;  %v568_v12 = vld [vmem:[%s890_s0 + $0x10] sm:$0xff]  }
   0x5   :  { %524 = vmatprep.mubr.bf16.mxu0 %v564_v4  ;;  %532 = vmatprep.mubr.bf16.mxu1 %v565_v5  ;;  %v567_v11 = vld [vmem:[%s890_s0 + $0x28] sm:$0xff]   ;;  %v569_v13 = vld [vmem:[%s890_s0 + $0x30] sm:$0xff]   ;;  %v570_v14 = vld [vmem:[%s890_s0 + $0x18] sm:$0xff]  }
   0x6   :  { %v571_v15 = vld [vmem:[%s890_s0 + $0x38] sm:$0xff]   ;;  %v485_v16 = vld [vmem:[%s891_s2 + $0x8] sm:$0xff]   ;;  %v454_v18 = vld [vmem:[%s891_s2] sm:$0xff]  }
   0x7   :  { %511 = vmatpush3.bf16.msra.mxu0 %v557_v1  ;;  %549 = vmatpush3.bf16.msra.mxu1 %v557_v1  ;;  %v489_v17 = vld [vmem:[%s891_s2 + $0x28] sm:$0xff]   ;;  %v726_v19 = vld [vmem:[%s891_s2 + $0x20] sm:$0xff]   ;;  %v731_v20 = vld [vmem:[%s891_s2 + $0x18] sm:$0xff]   ;;  %v459_v24 = vunpack.c.l.bf16 %v485_v16  ;;  %v455_v26 = vunpack.c.l.bf16 %v454_v18  ;;  %v460_v29 = vunpack.c.h.bf16 %v485_v16  ;;  %v456_v31 = vunpack.c.h.bf16 %v454_v18 }
   0x8   :  { %512 = vmatprep.subr.bf16.mxu0 %v558_v2  ;;  %542 = vmatprep.subr.bf16.mxu1 %v558_v2  ;;  %v736_v21 = vld [vmem:[%s891_s2 + $0x38] sm:$0xff]   ;;  %v741_v22 = vld [vmem:[%s891_s2 + $0x10] sm:$0xff]   ;;  %v746_v23 = vld [vmem:[%s892_s3] ss:$0 sm:$0xff]  ;;  %v475_v25 = vunpack.c.l.bf16 %v489_v17  ;;  %v471_v28 = vunpack.c.l.bf16 %v726_v19  ;;  %v476_v30 = vunpack.c.h.bf16 %v489_v17  ;;  %v472_v34 = vunpack.c.h.bf16 %v726_v19 }
   0x9   :  { %v751_v27 = vld [vmem:[%s891_s2 + $0x30] sm:$0xff]   ;;  %v467_v35 = vunpack.c.l.bf16 %v731_v20  ;;  %v483_v36 = vunpack.c.l.bf16 %v736_v21  ;;  %v463_v37 = vunpack.c.l.bf16 %v741_v22  ;;  %v468_v43 = vunpack.c.h.bf16 %v731_v20 }
   0xa   :  { %v479_v42 = vunpack.c.l.bf16 %v751_v27  ;;  %v484_v48 = vunpack.c.h.bf16 %v736_v21  ;;  %v464_v49 = vunpack.c.h.bf16 %v741_v22 }
   0xb   :  { %513 = vmatpush3.bf16.msra.mxu0 %v558_v2  ;;  %550 = vmatpush3.bf16.msra.mxu1 %v558_v2 }
   0xc   :  { %514 = vmatprep.subr.bf16.mxu0 %v559_v3  ;;  %543 = vmatprep.subr.bf16.mxu1 %v559_v3 }
   0xf   :  { %515 = vmatpush3.bf16.msra.mxu0 %v559_v3  ;;  %551 = vmatpush3.bf16.msra.mxu1 %v559_v3 }
  0x10   :  { %516 = vmatprep.subr.bf16.mxu0 %v560_v6  ;;  %544 = vmatprep.subr.bf16.mxu1 %v560_v6 }
  0x13   :  { %517 = vmatpush3.bf16.msra.mxu0 %v560_v6  ;;  %552 = vmatpush3.bf16.msra.mxu1 %v560_v6 }
  0x14   :  { %518 = vmatprep.subr.bf16.mxu0 %v561_v7  ;;  %545 = vmatprep.subr.bf16.mxu1 %v561_v7 }
  0x17   :  { %519 = vmatpush3.bf16.msra.mxu0 %v561_v7  ;;  %553 = vmatpush3.bf16.msra.mxu1 %v561_v7 }
  0x18   :  { %520 = vmatprep.subr.bf16.mxu0 %v562_v8  ;;  %546 = vmatprep.subr.bf16.mxu1 %v562_v8 }
  0x1b   :  { %521 = vmatpush3.bf16.msra.mxu0 %v562_v8  ;;  %554 = vmatpush3.bf16.msra.mxu1 %v562_v8 }
  0x1c   :  { %522 = vmatprep.subr.bf16.mxu0 %v563_v9  ;;  %547 = vmatprep.subr.bf16.mxu1 %v563_v9 }
  0x1f   :  { %523 = vmatpush3.bf16.msra.mxu0 %v563_v9  ;;  %555 = vmatpush3.bf16.msra.mxu1 %v563_v9 }
  0x22   :  { %525 = vmatmul.mubr.bf16.vlgmr.msra.gmra.mrb[0].mxu0 %v566_v10  ;;  %533 = vmatmul.mubr.bf16.vlgmr.msra.gmra.mrb[0].mxu1 %v567_v11 }
  0x23   :  { %528 = vmatprep.mubr.bf16.mxu0 %v568_v12  ;;  %536 = vmatprep.mubr.bf16.mxu1 %v569_v13 }
  0x2a   :  { %529 = vmatmul.mubr.bf16.gmra.mrb[4].mxu0 %v570_v14  ;;  %537 = vmatmul.mubr.bf16.gmra.mrb[4].mxu1 %v571_v15 }
  0xf5   :  { %v526_v32 = vpop.f32.mrb[0].mxu0  ;;  %v534_v33 = vpop.f32.mrb[0].mxu1 }
  0xf6   :  { %v198_v38 = vadd.f32 %v526_v32, %v746_v23  ;;  %v230_v39 = vadd.f32 %v534_v33, %v746_v23  ;;  %v189_v40 = vpop.f32.mrb[1].mxu0  ;;  %v221_v41 = vpop.f32.mrb[1].mxu1 }
  0xf7   :  { %v190_v44 = vadd.f32 %v746_v23, %v189_v40  ;;  %v222_v45 = vadd.f32 %v746_v23, %v221_v41  ;;  %v527_v46 = vpop.f32.mrb[2].mxu0  ;;  %v535_v47 = vpop.f32.mrb[2].mxu1 }
  0xf8   :  { %v286_v50 = vadd.f32 %v459_v24, %v198_v38  ;;  %v318_v51 = vsub.f32 0.0, %v198_v38  ;;  %v294_v52 = vadd.f32 %v475_v25, %v230_v39  ;;  %v326_v53 = vsub.f32 0.0, %v230_v39  ;;  %v192_v54 = vpop.f32.mrb[3].mxu0  ;;  %v224_v55 = vpop.f32.mrb[3].mxu1 }
  0xf9   :  { %v284_v56 = vadd.f32 %v455_v26, %v190_v44  ;;  %v316_v57 = vsub.f32 0.0, %v190_v44  ;;  %v292_v58 = vadd.f32 %v471_v28, %v222_v45  ;;  %v324_v59 = vsub.f32 0.0, %v222_v45 }
  0xfa   :  { %302 = vst [vmem:[%s893_s4 + $0x10] sm:$0xff] %v286_v50  ;;  %v336_v60 = vmul.f32 1.442695, %v318_v51  ;;  %310 = vst [vmem:[%s893_s4 + $0x50] sm:$0xff] %v294_v52  ;;  %v352_v61 = vmul.f32 1.442695, %v326_v53  ;;  %v201_v62 = vadd.f32 %v527_v46, %v746_v23  ;;  %v233_v63 = vadd.f32 %v535_v47, %v746_v23 }
  0xfb   :  { %300 = vst [vmem:[%s893_s4] sm:$0xff] %v284_v56  ;;  %v332_v0 = vmul.f32 1.442695, %v316_v57  ;;  %308 = vst [vmem:[%s893_s4 + $0x40] sm:$0xff] %v292_v58  ;;  %v348_v1 = vmul.f32 1.442695, %v324_v59  ;;  %v193_v2 = vadd.f32 %v746_v23, %v192_v54  ;;  %v225_v3 = vadd.f32 %v746_v23, %v224_v55 }
  0xfc   :  { %572 = vpow2.f32 %v336_v60  ;;  %v287_v4 = vadd.f32 %v460_v29, %v201_v62  ;;  %v319_v5 = vsub.f32 0.0, %v201_v62  ;;  %v295_v6 = vadd.f32 %v476_v30, %v233_v63 }
  0xfd   :  { %574 = vpow2.f32 %v352_v61  ;;  %v327_v7 = vsub.f32 0.0, %v233_v63  ;;  %v285_v8 = vadd.f32 %v456_v31, %v193_v2  ;;  %v317_v9 = vsub.f32 0.0, %v193_v2  ;;  %v530_v10 = vpop.f32.mrb[4].mxu0  ;;  %v538_v11 = vpop.f32.mrb[4].mxu1 }
  0xfe   :  { %576 = vpow2.f32 %v332_v0  ;;  %303 = vst [vmem:[%s893_s4 + $0x18] sm:$0xff] %v287_v4  ;;  %v338_v12 = vmul.f32 1.442695, %v319_v5  ;;  %311 = vst [vmem:[%s893_s4 + $0x58] sm:$0xff] %v295_v6  ;;  %v293_v13 = vadd.f32 %v472_v34, %v225_v3  ;;  %v325_v14 = vsub.f32 0.0, %v225_v3  ;;  %v205_v15 = vpop.f32.mrb[5].mxu0 }
  0xff   :  { %v237_v16 = vpop.f32.mrb[5].mxu1  ;;  %578 = vpow2.f32 %v348_v1  ;;  %v354_v17 = vmul.f32 1.442695, %v327_v7  ;;  %301 = vst [vmem:[%s893_s4 + $0x8] sm:$0xff] %v285_v8  ;;  %v334_v18 = vmul.f32 1.442695, %v317_v9  ;;  %v214_v19 = vadd.f32 %v530_v10, %v746_v23 }
 0x100   :  { %v531_v24 = vpop.f32.mrb[6].mxu0  ;;  %v539_v25 = vpop.f32.mrb[6].mxu1  ;;  %580 = vpow2.f32 %v338_v12  ;;  %309 = vst [vmem:[%s893_s4 + $0x48] sm:$0xff] %v293_v13  ;;  %v350_v26 = vmul.f32 1.442695, %v325_v14  ;;  %v246_v28 = vadd.f32 %v538_v11, %v746_v23  ;;  %v206_v29 = vadd.f32 %v746_v23, %v205_v15 }
 0x101   :  { %v208_v30 = vpop.f32.mrb[7].mxu0  ;;  %v240_v31 = vpop.f32.mrb[7].mxu1  ;;  %582 = vpow2.f32 %v354_v17  ;;  %v290_v32 = vadd.f32 %v467_v35, %v214_v19  ;;  %v322_v33 = vsub.f32 0.0, %v214_v19  ;;  %v238_v34 = vadd.f32 %v746_v23, %v237_v16 }
 0x102   :  { %584 = vpow2.f32 %v334_v18  ;;  %v298_v38 = vadd.f32 %v483_v36, %v246_v28  ;;  %v330_v39 = vsub.f32 0.0, %v246_v28  ;;  %v288_v40 = vadd.f32 %v463_v37, %v206_v29 }
 0x103   :  { %586 = vpow2.f32 %v350_v26  ;;  %306 = vst [vmem:[%s893_s4 + $0x30] sm:$0xff] %v290_v32  ;;  %v344_v41 = vmul.f32 1.442695, %v322_v33  ;;  %v320_v44 = vsub.f32 0.0, %v206_v29  ;;  %v296_v35 = vadd.f32 %v479_v42, %v238_v34 }
 0x104   :  { %314 = vst [vmem:[%s893_s4 + $0x70] sm:$0xff] %v298_v38  ;;  %v360_v45 = vmul.f32 1.442695, %v330_v39  ;;  %304 = vst [vmem:[%s893_s4 + $0x20] sm:$0xff] %v288_v40  ;;  %v328_v36 = vsub.f32 0.0, %v238_v34  ;;  %v217_v37 = vadd.f32 %v531_v24, %v746_v23  ;;  %v249_v46 = vadd.f32 %v539_v25, %v746_v23 }
 0x105   :  { %588 = vpow2.f32 %v344_v41  ;;  %v340_v47 = vmul.f32 1.442695, %v320_v44  ;;  %312 = vst [vmem:[%s893_s4 + $0x60] sm:$0xff] %v296_v35  ;;  %v209_v42 = vadd.f32 %v746_v23, %v208_v30  ;;  %v480_v50 = vunpack.c.h.bf16 %v751_v27 }
 0x106   :  { %v573_v51 = vpop.eup %572  ;;  %590 = vpow2.f32 %v360_v45  ;;  %v356_v52 = vmul.f32 1.442695, %v328_v36  ;;  %v291_v53 = vadd.f32 %v468_v43, %v217_v37  ;;  %v241_v54 = vadd.f32 %v746_v23, %v240_v31 }
 0x107   :  { %v575_v55 = vpop.eup %574  ;;  %v366_v56 = vadd.f32 1.0, %v573_v51  ;;  %592 = vpow2.f32 %v340_v47  ;;  %v299_v57 = vadd.f32 %v484_v48, %v249_v46  ;;  %v289_v27 = vadd.f32 %v464_v49, %v209_v42 }
 0x108   :  { %v577_v58 = vpop.eup %576  ;;  %v374_v59 = vadd.f32 1.0, %v575_v55  ;;  %594 = vpow2.f32 %v356_v52  ;;  %307 = vst [vmem:[%s893_s4 + $0x38] sm:$0xff] %v291_v53  ;;  %v323_v23 = vsub.f32 0.0, %v217_v37  ;;  %v297_v60 = vadd.f32 %v480_v50, %v241_v54 }
 0x109   :  { %v579_v20 = vpop.eup %578  ;;  %596 = vrcp.f32 %v366_v56  ;;  %v364_v43 = vadd.f32 1.0, %v577_v58  ;;  %315 = vst [vmem:[%s893_s4 + $0x78] sm:$0xff] %v299_v57  ;;  %305 = vst [vmem:[%s893_s4 + $0x28] sm:$0xff] %v289_v27  ;;  %v331_v3 = vsub.f32 0.0, %v249_v46  ;;  %v321_v5 = vsub.f32 0.0, %v209_v42 }
 0x10a   :  { %v581_v21 = vpop.eup %580  ;;  %598 = vrcp.f32 %v374_v59  ;;  %v372_v48 = vadd.f32 1.0, %v579_v20  ;;  %313 = vst [vmem:[%s893_s4 + $0x68] sm:$0xff] %v297_v60  ;;  %v346_v1 = vmul.f32 1.442695, %v323_v23  ;;  %v329_v8 = vsub.f32 0.0, %v241_v54 }
 0x10b   :  { %v583_v61 = vpop.eup %582  ;;  %600 = vrcp.f32 %v364_v43  ;;  %v367_v22 = vadd.f32 1.0, %v581_v21  ;;  %v362_v13 = vmul.f32 1.442695, %v331_v3  ;;  %v342_v16 = vmul.f32 1.442695, %v321_v5 }
 0x10c   :  { %v585_v49 = vpop.eup %584  ;;  %602 = vrcp.f32 %v372_v48  ;;  %v375_v62 = vadd.f32 1.0, %v583_v61  ;;  %v358_v18 = vmul.f32 1.442695, %v329_v8 }
 0x10d   :  { %v587_v63 = vpop.eup %586  ;;  %604 = vrcp.f32 %v367_v22  ;;  %v365_v0 = vadd.f32 1.0, %v585_v49 }
 0x10e   :  { %606 = vrcp.f32 %v375_v62  ;;  %v373_v2 = vadd.f32 1.0, %v587_v63 }
 0x10f   :  { %v589_v4 = vpop.eup %588  ;;  %608 = vrcp.f32 %v365_v0 }
 0x110   :  { %v591_v6 = vpop.eup %590  ;;  %610 = vrcp.f32 %v373_v2  ;;  %v370_v7 = vadd.f32 1.0, %v589_v4 }
 0x111   :  { %v593_v9 = vpop.eup %592  ;;  %v378_v10 = vadd.f32 1.0, %v591_v6  ;;  %612 = vpow2.f32 %v346_v1 }
 0x112   :  { %v595_v11 = vpop.eup %594  ;;  %614 = vrcp.f32 %v370_v7  ;;  %v368_v12 = vadd.f32 1.0, %v593_v9 }
 0x113   :  { %v597_v14 = vpop.eup %596  ;;  %616 = vrcp.f32 %v378_v10  ;;  %v376_v15 = vadd.f32 1.0, %v595_v11 }
 0x114   :  { %v599_v17 = vpop.eup %598  ;;  %414 = vst [vmem:[%s894_s5 + $0x10] sm:$0xff] %v597_v14  ;;  %618 = vrcp.f32 %v368_v12 }
 0x115   :  { %v601_v19 = vpop.eup %600  ;;  %422 = vst [vmem:[%s894_s5 + $0x50] sm:$0xff] %v599_v17  ;;  %620 = vrcp.f32 %v376_v15 }
 0x116   :  { %v603_v24 = vpop.eup %602  ;;  %412 = vst [vmem:[%s894_s5] sm:$0xff] %v601_v19  ;;  %622 = vpow2.f32 %v362_v13 }
 0x117   :  { %v605_v25 = vpop.eup %604  ;;  %420 = vst [vmem:[%s894_s5 + $0x40] sm:$0xff] %v603_v24  ;;  %624 = vpow2.f32 %v342_v16 }
 0x118   :  { %v607_v26 = vpop.eup %606  ;;  %415 = vst [vmem:[%s894_s5 + $0x18] sm:$0xff] %v605_v25  ;;  %626 = vpow2.f32 %v358_v18 }
 0x119   :  { %v609_v28 = vpop.eup %608  ;;  %423 = vst [vmem:[%s894_s5 + $0x58] sm:$0xff] %v607_v26 }
 0x11a   :  { %v611_v29 = vpop.eup %610  ;;  %413 = vst [vmem:[%s894_s5 + $0x8] sm:$0xff] %v609_v28 }
 0x11b   :  { %v613_v30 = vpop.eup %612  ;;  %421 = vst [vmem:[%s894_s5 + $0x48] sm:$0xff] %v611_v29 }
 0x11c   :  { %v615_v31 = vpop.eup %614  ;;  %v371_v32 = vadd.f32 1.0, %v613_v30 }
 0x11d   :  { %v617_v33 = vpop.eup %616  ;;  %418 = vst [vmem:[%s894_s5 + $0x30] sm:$0xff] %v615_v31 }
 0x11e   :  { %v619_v34 = vpop.eup %618  ;;  %426 = vst [vmem:[%s894_s5 + $0x70] sm:$0xff] %v617_v33  ;;  %628 = vrcp.f32 %v371_v32 }
 0x11f   :  { %v621_v38 = vpop.eup %620  ;;  %416 = vst [vmem:[%s894_s5 + $0x20] sm:$0xff] %v619_v34 }
 0x120   :  { %v623_v39 = vpop.eup %622  ;;  %424 = vst [vmem:[%s894_s5 + $0x60] sm:$0xff] %v621_v38 }
 0x121   :  { %v625_v40 = vpop.eup %624  ;;  %v379_v41 = vadd.f32 1.0, %v623_v39 }
 0x122   :  { %v627_v44 = vpop.eup %626  ;;  %v369_v35 = vadd.f32 1.0, %v625_v40 }
 0x123   :  { %630 = vrcp.f32 %v379_v41  ;;  %v377_v45 = vadd.f32 1.0, %v627_v44 }
 0x124   :  { %632 = vrcp.f32 %v369_v35 }
 0x125   :  { %634 = vrcp.f32 %v377_v45 }
 0x128   :  { %v629_v36 = vpop.eup %628 }
 0x129   :  { %419 = vst [vmem:[%s894_s5 + $0x38] sm:$0xff] %v629_v36 }
 0x12d   :  { %v631_v37 = vpop.eup %630 }
 0x12e   :  { %v633_v46 = vpop.eup %632  ;;  %427 = vst [vmem:[%s894_s5 + $0x78] sm:$0xff] %v631_v37 }
 0x12f   :  { %v635_v47 = vpop.eup %634  ;;  %417 = vst [vmem:[%s894_s5 + $0x28] sm:$0xff] %v633_v46 }
 0x130   :  { %425 = vst [vmem:[%s894_s5 + $0x68] sm:$0xff] %v635_v47 }

</bundles_post_ra>
